<compile_context>
chip_gen: v7x
topology: tpu7x:2x2x1
jax: 0.10.0
libtpu: 0.0.40
codegen_flags: <defaults>
</compile_context>

<pallas_src>
import functools

import jax
import jax.numpy as jnp
from jax.experimental import pallas as pl
from jax.experimental.pallas import tpu as pltpu

LANES = 128


def bce_aux_kernel(w_ref, b_ref, x_ref, y_ref, o_ref, *,
                   c_in, c_out, s_tile, r_rows, hw_total, apply_mask):
    """One grid step = one batch element x one (s_tile, 128)-pixel spatial slab.

    w_ref: (c_out, c_in) SMEM              -- 1x1-conv weight (scalar reads), f32
    b_ref: (c_out,)      SMEM              -- 1x1-conv bias   (scalar reads), f32
    x_ref: (1, c_in,  s_tile, 128) VMEM    -- image pixels, channels-first, native dtype
    y_ref: (1, c_out, s_tile, 128) VMEM    -- labels, native dtype
    o_ref: (1, 1, r_rows, 128) VMEM (f32)  -- per-(batch, tile) lane-wise partial BCE sums
    """
    t = pl.program_id(1)

    # Hoist + upcast each input channel slab once (bf16 -> f32 on the VPU); each slab is a
    # fully vreg-dense (s_tile, 128) tile.  Hoisting keeps the casts at c_in/pixel instead
    # of c_in*c_out/pixel.
    xs = [x_ref[0, ci].astype(jnp.float32) for ci in range(c_in)]

    total = None
    for co in range(c_out):
        # 1x1 conv for out-channel `co`: scalar-broadcast multiply/adds on the VPU.
        z = xs[0] * w_ref[co, 0]
        for ci in range(1, c_in):
            z = z + xs[ci] * w_ref[co, ci]
        z = z + b_ref[co]

        y = y_ref[0, co].astype(jnp.float32)
        # Numerically stable BCE-with-logits (PyTorch formulation):
        #   max(z, 0) - z*y + log(1 + exp(-|z|))
        per = jnp.maximum(z, 0.0) - z * y + jnp.log1p(jnp.exp(-jnp.abs(z)))
        total = per if total is None else total + per

    def reduce_rows(v):
        # (s_tile, 128) -> (r_rows, 128): VALU adds over aligned r_rows-sublane chunks.
        if s_tile == r_rows:
            return v
        acc = v[0:r_rows]
        for i in range(1, s_tile // r_rows):
            acc = acc + v[i * r_rows:(i + 1) * r_rows]
        return acc

    if apply_mask:
        last = pl.num_programs(1) - 1

        @pl.when(t != last)
        def _():
            o_ref[0, 0] = reduce_rows(total)

        @pl.when(t == last)
        def _():
            # Only the last spatial tile can contain padded / out-of-range pixels; keep the
            # iota+compare+select cost off every other tile.  Must stay a select (not an
            # arithmetic zeroing) so Inf/NaN from garbage boundary data is dropped.
            row = jax.lax.broadcasted_iota(jnp.int32, (s_tile, LANES), 0)
            lane = jax.lax.broadcasted_iota(jnp.int32, (s_tile, LANES), 1)
            pix = (t * s_tile + row) * LANES + lane
            o_ref[0, 0] = reduce_rows(jnp.where(pix < hw_total, total, 0.0))
    else:
        o_ref[0, 0] = reduce_rows(total)


def wrapper_model_aux_loss(images, labels, weight, bias, *, s_tile=1024):
    """BCEWithLogitsLoss(reduction='sum') over the 1x1-conv aux logits.

    images: [B, C_in, H, W]  (NCHW, PyTorch layout; kept in its native dtype -- bf16 halves
                              HBM traffic of this bandwidth-bound kernel)
    labels: [B, C_out, H, W] in [0, 1] (native dtype)
    weight: [C_out, C_in]    (1x1 conv weight)
    bias:   [C_out]
    s_tile: spatial rows per grid step (s_tile*128 pixels).  1024 fits every generation's
            default scoped VMEM; on v7x s_tile=2048 shaves a few % more.
    """
    B, C_in, H, W = images.shape
    C_out = weight.shape[0]
    assert weight.shape == (C_out, C_in)
    assert labels.shape == (B, C_out, H, W)
    HW = H * W

    # Free, contiguous reshapes -- no wrapper-side dtype widening, no HBM copies.
    x = images.reshape(B, C_in, HW)
    y = labels.reshape(B, C_out, HW)

    # Rare path: pad the flattened spatial axis up to a lane multiple.
    # TODO(synk): this materializes full HBM copies of x/y (~2x traffic); callers with
    #             HW % 128 != 0 should prefer a 128-aligned spatial layout.
    hw_pad = ((HW + LANES - 1) // LANES) * LANES
    if hw_pad != HW:
        x = jnp.pad(x, ((0, 0), (0, 0), (0, hw_pad - HW)))
        y = jnp.pad(y, ((0, 0), (0, 0), (0, hw_pad - HW)))
    S = hw_pad // LANES

    # Spatial tile: (s_tile, 128) pixels per grid step (sublane x lane dense).
    if s_tile >= S:
        s_tile = S                          # equals full extent -> always legal
    else:
        s_tile = max((s_tile // 8) * 8, 8)  # keep a multiple of 8 when tiling S
    num_t = pl.cdiv(S, s_tile)
    apply_mask = (hw_pad != HW) or (S % s_tile != 0)

    # Per-tile partials are reduced in-kernel to (r_rows, 128) before the store.
    r_rows = 8 if (s_tile % 8 == 0 and s_tile > 8) else s_tile

    x4 = x.reshape(B, C_in, S, LANES)
    y4 = y.reshape(B, C_out, S, LANES)
    w = weight.astype(jnp.float32)
    b = bias.reshape(C_out).astype(jnp.float32)

    kernel = functools.partial(
        bce_aux_kernel, c_in=C_in, c_out=C_out, s_tile=s_tile, r_rows=r_rows,
        hw_total=HW, apply_mask=apply_mask)

    # Advisory cost estimate (~50 VALU ops + 6 transcendentals per pixel for 4->3 channels).
    total_px = B * HW
    flops = total_px * (C_out * (2 * C_in + 8) + C_in + C_out)
    transcendentals = total_px * 2 * C_out
    bytes_accessed = (x4.size * x4.dtype.itemsize + y4.size * y4.dtype.itemsize
                      + B * num_t * r_rows * LANES * 4)

    partials = pl.pallas_call(
        kernel,
        out_shape=jax.ShapeDtypeStruct((B, num_t, r_rows, LANES), jnp.float32),
        grid_spec=pltpu.PrefetchScalarGridSpec(
            num_scalar_prefetch=0,
            grid=(B, num_t),
            in_specs=[
                pl.BlockSpec(memory_space=pltpu.MemorySpace.SMEM),   # weight (C_out, C_in)
                pl.BlockSpec(memory_space=pltpu.MemorySpace.SMEM),   # bias   (C_out,)
                pl.BlockSpec((1, C_in, s_tile, LANES), lambda bb, t: (bb, 0, t, 0)),
                pl.BlockSpec((1, C_out, s_tile, LANES), lambda bb, t: (bb, 0, t, 0)),
            ],
            out_specs=pl.BlockSpec((1, 1, r_rows, LANES), lambda bb, t: (bb, t, 0, 0)),
        ),
        compiler_params=pltpu.CompilerParams(
            # Every (batch, tile) output block is written exactly once, so both axes are
            # megacore-eligible (lets the spatial axis split across v7x's 2 TCs even at B=1).
            dimension_semantics=("parallel", "parallel"),
        ),
        cost_estimate=pl.CostEstimate(
            flops=int(flops),
            transcendentals=int(transcendentals),
            bytes_accessed=int(bytes_accessed)),
    )(w, b, x4, y4)

    # Single tiny final reduction of the per-(batch, tile), lane-wise partial sums.
    return jnp.sum(partials)


def reference_loss(images, labels, weight, bias):
    logits = jnp.einsum("oc,bchw->bohw", weight, images) + bias.reshape(1, -1, 1, 1)
    per = (jnp.maximum(logits, 0.0) - logits * labels
           + jnp.log1p(jnp.exp(-jnp.abs(logits))))
    return jnp.sum(per)


if __name__ == "__main__":
    key = jax.random.PRNGKey(0)
    k_img, k_lbl, k_w, k_b = jax.random.split(key, 4)

    B, C_in, H, W = 2, 4, 16, 16
    C_out = 3  # aux segmentation head channels

    # bf16 at the kernel boundary: halves HBM traffic of the bandwidth-bound kernel.
    # The kernel upcasts each tile to f32 internally (also required on v5e's VPU/EUP).
    images = jax.random.normal(k_img, (B, C_in, H, W), dtype=jnp.float32).astype(jnp.bfloat16)
    labels = jax.random.uniform(k_lbl, (B, C_out, H, W), dtype=jnp.float32).astype(jnp.bfloat16)

    # Deterministic synthetic parameters for the inner model's 1x1-conv aux head.
    weight = jax.random.normal(k_w, (C_out, C_in), dtype=jnp.float32) * 0.1
    bias = jax.random.normal(k_b, (C_out,), dtype=jnp.float32) * 0.1

    loss = wrapper_model_aux_loss(images, labels, weight, bias)
    loss = jax.block_until_ready(loss)

    ref = reference_loss(images.astype(jnp.float32), labels.astype(jnp.float32), weight, bias)
    assert jnp.allclose(loss, ref, rtol=1e-5, atol=1e-3), (loss, ref)

    print("KERNEL_OK")
</pallas_src>

<mosaic_0001>
module attributes {stable_mosaic.version = 11 : i64} {
  func.func @bce_aux_kernel(%arg0: i32, %arg1: i32, %arg2: memref<3x4xf32, #tpu.memory_space<smem>>, %arg3: memref<3xf32, #tpu.memory_space<smem>>, %arg4: memref<1x4x2x128xbf16, #tpu.memory_space<vmem>>, %arg5: memref<1x3x2x128xbf16, #tpu.memory_space<vmem>>, %arg6: memref<1x1x2x128xf32, #tpu.memory_space<vmem>>) attributes {dimension_semantics = [#tpu.dimension_semantics<parallel>, #tpu.dimension_semantics<parallel>], iteration_bounds = array<i64: 2, 1>, scalar_prefetch = 0 : i64, scratch_operands = 0 : i64, tpu.core_type = #tpu.core_type<tc>, window_params = [{transform_indices = @transform_0, window_bounds = array<i64: 3, 4>}, {transform_indices = @transform_1, window_bounds = array<i64: 3>}, {transform_indices = @transform_2, window_bounds = array<i64: 1, 4, 2, 128>}, {transform_indices = @transform_3, window_bounds = array<i64: 1, 3, 2, 128>}, {transform_indices = @transform_4, window_bounds = array<i64: 1, 1, 2, 128>}]} {
    %c0 = arith.constant 0 : index
    %c0_0 = arith.constant 0 : index
    %c0_1 = arith.constant 0 : index
    %c0_2 = arith.constant 0 : index
    %0 = vector.load %arg4[%c0, %c0_0, %c0_1, %c0_2] : memref<1x4x2x128xbf16, #tpu.memory_space<vmem>>, vector<1x1x2x128xbf16>
    %1 = vector.shape_cast %0 : vector<1x1x2x128xbf16> to vector<2x128xbf16>
    %2 = arith.extf %1 : vector<2x128xbf16> to vector<2x128xf32>
    %c0_3 = arith.constant 0 : index
    %c1 = arith.constant 1 : index
    %c0_4 = arith.constant 0 : index
    %c0_5 = arith.constant 0 : index
    %3 = vector.load %arg4[%c0_3, %c1, %c0_4, %c0_5] : memref<1x4x2x128xbf16, #tpu.memory_space<vmem>>, vector<1x1x2x128xbf16>
    %4 = vector.shape_cast %3 : vector<1x1x2x128xbf16> to vector<2x128xbf16>
    %5 = arith.extf %4 : vector<2x128xbf16> to vector<2x128xf32>
    %c0_6 = arith.constant 0 : index
    %c2 = arith.constant 2 : index
    %c0_7 = arith.constant 0 : index
    %c0_8 = arith.constant 0 : index
    %6 = vector.load %arg4[%c0_6, %c2, %c0_7, %c0_8] : memref<1x4x2x128xbf16, #tpu.memory_space<vmem>>, vector<1x1x2x128xbf16>
    %7 = vector.shape_cast %6 : vector<1x1x2x128xbf16> to vector<2x128xbf16>
    %8 = arith.extf %7 : vector<2x128xbf16> to vector<2x128xf32>
    %c0_9 = arith.constant 0 : index
    %c3 = arith.constant 3 : index
    %c0_10 = arith.constant 0 : index
    %c0_11 = arith.constant 0 : index
    %9 = vector.load %arg4[%c0_9, %c3, %c0_10, %c0_11] : memref<1x4x2x128xbf16, #tpu.memory_space<vmem>>, vector<1x1x2x128xbf16>
    %10 = vector.shape_cast %9 : vector<1x1x2x128xbf16> to vector<2x128xbf16>
    %11 = arith.extf %10 : vector<2x128xbf16> to vector<2x128xf32>
    %c0_12 = arith.constant 0 : index
    %c0_13 = arith.constant 0 : index
    %12 = memref.load %arg2[%c0_12, %c0_13] : memref<3x4xf32, #tpu.memory_space<smem>>
    %13 = vector.broadcast %12 : f32 to vector<2x128xf32>
    %14 = arith.mulf %2, %13 : vector<2x128xf32>
    %c0_14 = arith.constant 0 : index
    %c1_15 = arith.constant 1 : index
    %15 = memref.load %arg2[%c0_14, %c1_15] : memref<3x4xf32, #tpu.memory_space<smem>>
    %16 = vector.broadcast %15 : f32 to vector<2x128xf32>
    %17 = arith.mulf %5, %16 : vector<2x128xf32>
    %18 = arith.addf %14, %17 : vector<2x128xf32>
    %c0_16 = arith.constant 0 : index
    %c2_17 = arith.constant 2 : index
    %19 = memref.load %arg2[%c0_16, %c2_17] : memref<3x4xf32, #tpu.memory_space<smem>>
    %20 = vector.broadcast %19 : f32 to vector<2x128xf32>
    %21 = arith.mulf %8, %20 : vector<2x128xf32>
    %22 = arith.addf %18, %21 : vector<2x128xf32>
    %c0_18 = arith.constant 0 : index
    %c3_19 = arith.constant 3 : index
    %23 = memref.load %arg2[%c0_18, %c3_19] : memref<3x4xf32, #tpu.memory_space<smem>>
    %24 = vector.broadcast %23 : f32 to vector<2x128xf32>
    %25 = arith.mulf %11, %24 : vector<2x128xf32>
    %26 = arith.addf %22, %25 : vector<2x128xf32>
    %c0_20 = arith.constant 0 : index
    %27 = memref.load %arg3[%c0_20] : memref<3xf32, #tpu.memory_space<smem>>
    %28 = vector.broadcast %27 : f32 to vector<2x128xf32>
    %29 = arith.addf %26, %28 : vector<2x128xf32>
    %c0_21 = arith.constant 0 : index
    %c0_22 = arith.constant 0 : index
    %c0_23 = arith.constant 0 : index
    %c0_24 = arith.constant 0 : index
    %30 = vector.load %arg5[%c0_21, %c0_22, %c0_23, %c0_24] : memref<1x3x2x128xbf16, #tpu.memory_space<vmem>>, vector<1x1x2x128xbf16>
    %31 = vector.shape_cast %30 : vector<1x1x2x128xbf16> to vector<2x128xbf16>
    %32 = arith.extf %31 : vector<2x128xbf16> to vector<2x128xf32>
    %cst = arith.constant 0.000000e+00 : f32
    %33 = vector.broadcast %cst : f32 to vector<2x128xf32>
    %34 = arith.maximumf %29, %33 : vector<2x128xf32>
    %35 = arith.mulf %29, %32 : vector<2x128xf32>
    %36 = arith.subf %34, %35 : vector<2x128xf32>
    %37 = math.absf %29 : vector<2x128xf32>
    %cst_25 = arith.constant 0.000000e+00 : f32
    %38 = vector.broadcast %cst_25 : f32 to vector<2x128xf32>
    %39 = arith.subf %38, %37 : vector<2x128xf32>
    %40 = math.exp %39 : vector<2x128xf32>
    %41 = math.log1p %40 : vector<2x128xf32>
    %42 = arith.addf %36, %41 : vector<2x128xf32>
    %c1_26 = arith.constant 1 : index
    %c0_27 = arith.constant 0 : index
    %43 = memref.load %arg2[%c1_26, %c0_27] : memref<3x4xf32, #tpu.memory_space<smem>>
    %44 = vector.broadcast %43 : f32 to vector<2x128xf32>
    %45 = arith.mulf %2, %44 : vector<2x128xf32>
    %c1_28 = arith.constant 1 : index
    %c1_29 = arith.constant 1 : index
    %46 = memref.load %arg2[%c1_28, %c1_29] : memref<3x4xf32, #tpu.memory_space<smem>>
    %47 = vector.broadcast %46 : f32 to vector<2x128xf32>
    %48 = arith.mulf %5, %47 : vector<2x128xf32>
    %49 = arith.addf %45, %48 : vector<2x128xf32>
    %c1_30 = arith.constant 1 : index
    %c2_31 = arith.constant 2 : index
    %50 = memref.load %arg2[%c1_30, %c2_31] : memref<3x4xf32, #tpu.memory_space<smem>>
    %51 = vector.broadcast %50 : f32 to vector<2x128xf32>
    %52 = arith.mulf %8, %51 : vector<2x128xf32>
    %53 = arith.addf %49, %52 : vector<2x128xf32>
    %c1_32 = arith.constant 1 : index
    %c3_33 = arith.constant 3 : index
    %54 = memref.load %arg2[%c1_32, %c3_33] : memref<3x4xf32, #tpu.memory_space<smem>>
    %55 = vector.broadcast %54 : f32 to vector<2x128xf32>
    %56 = arith.mulf %11, %55 : vector<2x128xf32>
    %57 = arith.addf %53, %56 : vector<2x128xf32>
    %c1_34 = arith.constant 1 : index
    %58 = memref.load %arg3[%c1_34] : memref<3xf32, #tpu.memory_space<smem>>
    %59 = vector.broadcast %58 : f32 to vector<2x128xf32>
    %60 = arith.addf %57, %59 : vector<2x128xf32>
    %c0_35 = arith.constant 0 : index
    %c1_36 = arith.constant 1 : index
    %c0_37 = arith.constant 0 : index
    %c0_38 = arith.constant 0 : index
    %61 = vector.load %arg5[%c0_35, %c1_36, %c0_37, %c0_38] : memref<1x3x2x128xbf16, #tpu.memory_space<vmem>>, vector<1x1x2x128xbf16>
    %62 = vector.shape_cast %61 : vector<1x1x2x128xbf16> to vector<2x128xbf16>
    %63 = arith.extf %62 : vector<2x128xbf16> to vector<2x128xf32>
    %cst_39 = arith.constant 0.000000e+00 : f32
    %64 = vector.broadcast %cst_39 : f32 to vector<2x128xf32>
    %65 = arith.maximumf %60, %64 : vector<2x128xf32>
    %66 = arith.mulf %60, %63 : vector<2x128xf32>
    %67 = arith.subf %65, %66 : vector<2x128xf32>
    %68 = math.absf %60 : vector<2x128xf32>
    %cst_40 = arith.constant 0.000000e+00 : f32
    %69 = vector.broadcast %cst_40 : f32 to vector<2x128xf32>
    %70 = arith.subf %69, %68 : vector<2x128xf32>
    %71 = math.exp %70 : vector<2x128xf32>
    %72 = math.log1p %71 : vector<2x128xf32>
    %73 = arith.addf %67, %72 : vector<2x128xf32>
    %74 = arith.addf %42, %73 : vector<2x128xf32>
    %c2_41 = arith.constant 2 : index
    %c0_42 = arith.constant 0 : index
    %75 = memref.load %arg2[%c2_41, %c0_42] : memref<3x4xf32, #tpu.memory_space<smem>>
    %76 = vector.broadcast %75 : f32 to vector<2x128xf32>
    %77 = arith.mulf %2, %76 : vector<2x128xf32>
    %c2_43 = arith.constant 2 : index
    %c1_44 = arith.constant 1 : index
    %78 = memref.load %arg2[%c2_43, %c1_44] : memref<3x4xf32, #tpu.memory_space<smem>>
    %79 = vector.broadcast %78 : f32 to vector<2x128xf32>
    %80 = arith.mulf %5, %79 : vector<2x128xf32>
    %81 = arith.addf %77, %80 : vector<2x128xf32>
    %c2_45 = arith.constant 2 : index
    %c2_46 = arith.constant 2 : index
    %82 = memref.load %arg2[%c2_45, %c2_46] : memref<3x4xf32, #tpu.memory_space<smem>>
    %83 = vector.broadcast %82 : f32 to vector<2x128xf32>
    %84 = arith.mulf %8, %83 : vector<2x128xf32>
    %85 = arith.addf %81, %84 : vector<2x128xf32>
    %c2_47 = arith.constant 2 : index
    %c3_48 = arith.constant 3 : index
    %86 = memref.load %arg2[%c2_47, %c3_48] : memref<3x4xf32, #tpu.memory_space<smem>>
    %87 = vector.broadcast %86 : f32 to vector<2x128xf32>
    %88 = arith.mulf %11, %87 : vector<2x128xf32>
    %89 = arith.addf %85, %88 : vector<2x128xf32>
    %c2_49 = arith.constant 2 : index
    %90 = memref.load %arg3[%c2_49] : memref<3xf32, #tpu.memory_space<smem>>
    %91 = vector.broadcast %90 : f32 to vector<2x128xf32>
    %92 = arith.addf %89, %91 : vector<2x128xf32>
    %c0_50 = arith.constant 0 : index
    %c2_51 = arith.constant 2 : index
    %c0_52 = arith.constant 0 : index
    %c0_53 = arith.constant 0 : index
    %93 = vector.load %arg5[%c0_50, %c2_51, %c0_52, %c0_53] : memref<1x3x2x128xbf16, #tpu.memory_space<vmem>>, vector<1x1x2x128xbf16>
    %94 = vector.shape_cast %93 : vector<1x1x2x128xbf16> to vector<2x128xbf16>
    %95 = arith.extf %94 : vector<2x128xbf16> to vector<2x128xf32>
    %cst_54 = arith.constant 0.000000e+00 : f32
    %96 = vector.broadcast %cst_54 : f32 to vector<2x128xf32>
    %97 = arith.maximumf %92, %96 : vector<2x128xf32>
    %98 = arith.mulf %92, %95 : vector<2x128xf32>
    %99 = arith.subf %97, %98 : vector<2x128xf32>
    %100 = math.absf %92 : vector<2x128xf32>
    %cst_55 = arith.constant 0.000000e+00 : f32
    %101 = vector.broadcast %cst_55 : f32 to vector<2x128xf32>
    %102 = arith.subf %101, %100 : vector<2x128xf32>
    %103 = math.exp %102 : vector<2x128xf32>
    %104 = math.log1p %103 : vector<2x128xf32>
    %105 = arith.addf %99, %104 : vector<2x128xf32>
    %106 = arith.addf %74, %105 : vector<2x128xf32>
    %c0_56 = arith.constant 0 : index
    %c0_57 = arith.constant 0 : index
    %c0_58 = arith.constant 0 : index
    %c0_59 = arith.constant 0 : index
    %107 = vector.load %arg6[%c0_56, %c0_57, %c0_58, %c0_59] : memref<1x1x2x128xf32, #tpu.memory_space<vmem>>, vector<1x1x2x128xf32>
    %108 = vector.shape_cast %107 : vector<1x1x2x128xf32> to vector<2x128xf32>
    %109 = vector.shape_cast %106 : vector<2x128xf32> to vector<1x1x2x128xf32>
    tpu.vector_store %arg6[%c0_56, %c0_57, %c0_58, %c0_59], %109 {strides = array<i32>} : memref<1x1x2x128xf32, #tpu.memory_space<vmem>>, vector<1x1x2x128xf32>,
    return
  }
  func.func @transform_0(%arg0: i32, %arg1: i32) -> (i32, i32) {
    %c0_i32 = arith.constant 0 : i32
    %c0_i32_0 = arith.constant 0 : i32
    %c0_i32_1 = arith.constant 0 : i32
    return %c0_i32, %c0_i32_0 : i32, i32
  }
  func.func @transform_1(%arg0: i32, %arg1: i32) -> i32 {
    %c0_i32 = arith.constant 0 : i32
    %c0_i32_0 = arith.constant 0 : i32
    return %c0_i32 : i32
  }
  func.func @transform_2(%arg0: i32, %arg1: i32) -> (i32, i32, i32, i32) {
    %c0_i32 = arith.constant 0 : i32
    %c0_i32_0 = arith.constant 0 : i32
    %c0_i32_1 = arith.constant 0 : i32
    return %arg0, %c0_i32, %arg1, %c0_i32_0 : i32, i32, i32, i32
  }
  func.func @transform_3(%arg0: i32, %arg1: i32) -> (i32, i32, i32, i32) {
    %c0_i32 = arith.constant 0 : i32
    %c0_i32_0 = arith.constant 0 : i32
    %c0_i32_1 = arith.constant 0 : i32
    return %arg0, %c0_i32, %arg1, %c0_i32_0 : i32, i32, i32, i32
  }
  func.func @transform_4(%arg0: i32, %arg1: i32) -> (i32, i32, i32, i32) {
    %c0_i32 = arith.constant 0 : i32
    %c0_i32_0 = arith.constant 0 : i32
    %c0_i32_1 = arith.constant 0 : i32
    return %arg0, %arg1, %c0_i32, %c0_i32_0 : i32, i32, i32, i32
  }
}

</mosaic_0001>

<bundles_post_ra>
// kernel: tpu_custom_call.1
= control target key start
LH: loop header
LB: loop body
LE: loop exit
PB: predicated region body
PF: predicated region fallthrough
CT: control target
= control target key end

     0   :  { %9 = vsyncpa [#allocation5], 0  ;;  %s1105_s0 = inlined_call_operand.hbm [shape: f32[3,4], index: 0, kind: input, shape index: {}]   ;;  %s1106_s1 = inlined_call_operand.vmem [shape: f32[3], index: 1, kind: input, shape index: {}]   ;;  %s1107_s2 = inlined_call_operand.hbm [shape: bf16[2,4,2,128], index: 2, kind: input, shape index: {}]   ;;  %s1108_s3 = inlined_call_operand.vmem [shape: bf16[2,3,2,128], index: 3, kind: input, shape index: {}]   ;;  %s1109_s4 = inlined_call_operand.hbm [shape: f32[2,1,2,128], index: 4, kind: output, shape index: {}]  }
   0x1   :  { %10 = vsyncpa [#allocation6], 0 }
   0x2   :  { %11 = vsyncpa [#allocation3], 0 }
   0x3   :  { %13 = vsyncpa [#allocation3 + $0x1], 0 }
   0x4   :  { %14 = vsyncpa [#allocation4], 0 }
   0x5   :  { %16 = vsyncpa [#allocation4 + $0x1], 0  ;;  %s864_s15 = smov 0   ;;  %s866_s16 = smov 0  }
   0x6   :  { %s868_s17 = smov 0   ;;  %s870_s18 = smov 0  }
   0x7   :  { %s872_s19 = smov 0   ;;  %s874_s20 = smov 0  }
   0x8 LB: > { %s548_s21 = sadd.s32 4294967295, %s831_s20   ;;  %s549_s22 = sadd.s32 4294967294, %s831_s20   ;;  %s831_s20 = sphi %s874_s20, %s22_s20   ;;  %s827_s19 = sphi %s872_s19, %s1132_s19   ;;  %s823_s18 = sphi %s870_s18, %s1131_s18   ;;  %s819_s17 = sphi %s868_s17, %s1130_s17   ;;  %s815_s16 = sphi %s866_s16, %s1129_s16   ;;  %s811_s15 = sphi %s864_s15, %s1128_s15  }
   0x9   : > { %s85_s23 = sadd.s32 1, %s819_s17  ;;  %p92_p0 = scmp.ne.s32.totalorder %s819_s17, %s815_s16 }
   0xa   : > { %p93_p1 = scmp.eq.s32.totalorder %s831_s20, 0  ;;  %p98_p2 = scmp.ne.s32.totalorder %s815_s16, %s811_s15 }
   0xb   : > { %p902_p3 = scmp.eq.s32.totalorder %s548_s21, 0  ;;  %p152_p4 = scmp.eq.s32.totalorder %s548_s21, 1 }
   0xc   : > { %p94_p5 = por %p93_p1, %p92_p0  ;;  %p158_p6 = scmp.eq.s32.totalorder %s549_s22, 1 }
   0xd   : > { %s1114_s24 = scalar_select %p902_p3, 1, 0 }
   0xe   : > { %p908_p7 = por %p902_p3, %p98_p2  ;;  %p912_p8 = por %p152_p4, %p92_p0 }
   0xf   : > { %p916_p9 = por %p158_p6, %p98_p2  ;;  %p550_p10 = scmp.ge.s32.totalorder %s831_s20, 1 }
  0x10   : > { %s1115_s25 = scalar_select %p908_p7, 1, 0 }
  0x11   : > { %s1116_s26 = scalar_select %p912_p8, 1, 0 }
  0x12   : > { %s1117_s27 = scalar_select %p916_p9, 1, 0 }
  0x13   : > { %p165_p11 = scmp.lt.s32.totalorder %s831_s20, 3  ;;  %p615_p1 = scmp.lt.s32.totalorder %s831_s20, 2 }
  0x14   : > { %s187_s5 = sshll.u32 %s1106_s1, 4  ;;  %s198_s8 = sand.u32 1, %s819_s17   ;;  %s188_s5 = int_to_ptr.vmem [resolvable:$true] %s187_s5 }
  0x15   : > { %p923_p13 = pnand %p550_p10, %p165_p11  ;;  %p933_p4 = pnand %p615_p1, %p94_p5 }
  0x16   : > { %s34_s9 = sadd.s32 1, %s827_s19  ;;  %s683_s12 = scalar_lea.hbm %s1105_s0, 64 }
  0x17   : > { %p598_p0 = pneg %p923_p13  ;;  %p684_p5 = scmp.ne.s32.totalorder %s1105_s0, %s683_s12 }
  0x18   : > { %p690_p1 = scmp.lt.u32.totalorder %s683_s12, %s1105_s0 }
  0x19   : > { %p939_p2 = pnand %p598_p0, %p902_p3 }
  0x1b   : > { %p685_p6 = pneg %p939_p2 }
  0x1d   : > { %p686_p10 = pnand %p685_p6, %p684_p5 }
  0x1f   : > { %p687_p11 = pneg %p686_p10 }
  0x21   : > { %p692_p0 = pnand %p690_p1, %p687_p11 }
  0x23   : > { %695 = shalt.err (!%p692_p0)
}
  0x24   : > { %s833_s29 = smov [#allocation2]   ;;  %s696_s11 = scalar_lea.vmem %s188_s5, 16 }
  0x25   : > { %601 = dma.hbm_to_smem (!%p939_p2), %s1105_s0, 64, %s833_s29, [#allocation5]  }
  0x26   : > { %p697_p12 = scmp.ne.s32.totalorder %s188_s5, %s696_s11  ;;  %p704_p7 = scmp.lt.s32.totalorder %s188_s5, %s188_s5 }
  0x27   : > { %p705_p5 = scmp.lt.s32.totalorder %s696_s11, %s696_s11 }
  0x28   : > { %p699_p9 = pnand %p697_p12, %p685_p6 }
  0x29   : > { %p706_p10 = por %p705_p5, %p704_p7 }
  0x2a   : > { %p700_p8 = pneg %p699_p9 }
  0x2c   : > { %p707_p3 = pnand %p706_p10, %p700_p8 }
  0x2e   : > { %710 = shalt.err (!%p707_p3)
}
  0x2f   : > { %s834_s13 = smov [#allocation7]   ;;  %p36_p11 = scmp.ge.s32.totalorder %s34_s9, 2 }
  0x30   : > { %604 = dma.vmem_to_smem (!%p939_p2), %s188_s5, 16, %s834_s13, [#allocation6]  }
  0x31   : > { %s554_s12 = sshll.u32 %s198_s8, 2  ;;  %s584_s14 = sshll.u32 %s827_s19, 6 }
  0x32   : > { %s1134_s9 = smov (%p36_p11, %s34_s9), 0  ;;  %s971_s7 = scalar_lea.hbm %s1107_s2, %s584_s14 }
  0x33   : > { %s80_s29 = ssub.s32 %s827_s19, %s1134_s9  ;;  %s202_s30 = scalar_lea.vmem [#allocation8], %s554_s12 }
  0x34   : > { %s210_s5 = sshll.u32 %s202_s30, 4  ;;  %p83_p3 = scmp.eq.s32.totalorder %s80_s29, 0  ;;  %s975_s5 = int_to_ptr.vmem [resolvable:$true] %s210_s5 }
  0x35   : > { %s984_s11 = scalar_lea.sflag [#allocation3], %s198_s8  ;;  %s711_s13 = scalar_lea.hbm %s971_s7, 64 }
  0x36   : > { %s980_s10 = scalar_select %p83_p3, %s819_s17, %s85_s23  }
  0x37   : > { %p712_p7 = scmp.ne.s32.totalorder %s971_s7, %s711_s13  ;;  %p713_p8 = pneg %p933_p4 }
  0x38   : > { %s716_s21 = scalar_lea.hbm %s1107_s2, 128  ;;  %p717_p2 = scmp.lt.u32.totalorder %s971_s7, %s1107_s2 }
  0x39   : > { %p714_p9 = pnand %p713_p8, %p712_p7  ;;  %p718_p6 = scmp.lt.u32.totalorder %s716_s21, %s711_s13 }
  0x3a   : > { %p720_p0 = scmp.lt.u32.totalorder %s711_s13, %s971_s7 }
  0x3b   : > { %p715_p12 = pneg %p714_p9  ;;  %p719_p1 = por %p718_p6, %p717_p2 }
  0x3d   : > { %p721_p5 = por %p720_p0, %p719_p1 }
  0x3f   : > { %p722_p10 = pnand %p721_p5, %p715_p12 }
  0x41   : > { %725 = shalt.err (!%p722_p10)
}
  0x42   : > { %s726_s23 = scalar_lea.vmem %s975_s5, 64  ;;  %s835_s8 = smov [#allocation8]  }
  0x43   : > { %p727_p11 = scmp.ne.s32.totalorder %s975_s5, %s726_s23  ;;  %s731_s30 = sshll.u32 %s835_s8, 4  ;;  %s732_s30 = int_to_ptr.vmem [resolvable:$false] %s731_s30 }
  0x44   : > { %s733_s14 = scalar_lea.vmem %s732_s30, 128  ;;  %p734_p9 = scmp.lt.s32.totalorder %s975_s5, %s732_s30 }
  0x45   : > { %p729_p3 = pnand %p727_p11, %p713_p8  ;;  %p735_p2 = scmp.lt.s32.totalorder %s733_s14, %s726_s23 }
  0x47   : > { %p730_p7 = pneg %p729_p3  ;;  %p736_p6 = por %p735_p2, %p734_p9 }
  0x49   : > { %p737_p1 = pnand %p736_p6, %p730_p7 }
  0x4b   : > { %740 = shalt.err (!%p737_p1)
}
  0x4c   : > { %s836_s13 = smov 16   ;;  %s837_s12 = smov 1  }
  0x4d   : > { %608 = dma.hbm_to_vmem [thread:$0]  (!%p933_p4), %s971_s7, 64, %s975_s5, %s984_s11, %s836_s13, %s836_s13, %s837_s12  }
  0x4e   : > { %232 = sbr.rel (%p923_p13) target bundleno = 167 (0xa7), region = 36  ;;  %p1121_p8 = scmp.ne.s32.totalorder (!%p923_p13), %s1114_s24, 0 }
  0x55   : > { %794 = dma.done.wait (%p1121_p8), [#allocation5], 64  }
  0x56   : > { %796 = vsyncadd (%p1121_p8), [#allocation5], 4294967232 }
  0x57   : > { %798 = dma.done.wait (%p1121_p8), [#allocation6], 16  }
  0x58   : > { %800 = vsyncadd (%p1121_p8), [#allocation6], 4294967280  ;;  %s1023_s21 = sand.u32 1, %s815_s16   ;;  %p1122_p13 = scmp.ne.s32.totalorder %s1115_s25, 0 }
  0x59   : > { %s560_s28 = sshll.u32 %s1023_s21, 2  ;;  %s243_s6 = scalar_lea.sflag [#allocation3], %s1023_s21 }
  0x5a   : > { %s246_s7 = scalar_lea.vmem [#allocation8], %s560_s28 }
  0x5b   : > { %802 = dma.done.wait (%p1122_p13), %s243_s6, 64  }
  0x5c   : > { %804 = vsyncadd (%p1122_p13), %s243_s6, 4294967232 }
  0x5d   : > { %251 = sfence }
  0x5e   : > { %v286_v0 = vld [vmem:[%s246_s7] sm:$0x1]  ;;  %v562_v1 = vld [vmem:[%s246_s7 + $0x1] sm:$0x1]  ;;  %s297_s5 = sld [smem:[#allocation2]]  ;;  %s565_s24 = sld [smem:[#allocation2 + $0x1]] }
  0x5f   : > { %v563_v2 = vld [vmem:[%s246_s7 + $0x2] sm:$0x1]  ;;  %s566_s11 = sld [smem:[#allocation2 + $0x2]]  ;;  %v564_v3 = vld [vmem:[%s246_s7 + $0x3] sm:$0x1]  ;;  %s567_s22 = sld [smem:[#allocation2 + $0x3]]  ;;  %v287_v4 = vunpack.c.l.bf16 %v286_v0  ;;  %v290_v5 = vunpack.c.l.bf16 %v562_v1 }
  0x60   : > { %s1031_s29 = sld [smem:[#allocation7]]  ;;  %v293_v6 = vunpack.c.l.bf16 %v563_v2  ;;  %s569_s8 = sld [smem:[#allocation2 + $0x81]]  ;;  %v296_v7 = vunpack.c.l.bf16 %v564_v3 }
  0x61   : > { %s568_s23 = sld [smem:[#allocation2 + $0x80]]  ;;  %s570_s30 = sld [smem:[#allocation2 + $0x82]] }
  0x62   : > { %s571_s25 = sld [smem:[#allocation2 + $0x83]]  ;;  %s574_s14 = sld [smem:[#allocation2 + $0x100]] }
  0x63   : > { %s575_s13 = sld [smem:[#allocation2 + $0x101]]  ;;  %s576_s12 = sld [smem:[#allocation2 + $0x102]] }
  0x64   : > { %v298_v8 = vstv %s297_s5  ;;  %v301_v9 = vstv %s565_s24  ;;  %s1033_s28 = sld [smem:[#allocation2 + $0x103]]  ;;  %s1035_s6 = sld [smem:[#allocation7 + $0x1]] }
  0x65   : > { %v299_v10 = vmul.f32 %v298_v8, %v287_v4  ;;  %v302_v11 = vmul.f32 %v301_v9, %v290_v5  ;;  %v305_v12 = vstv %s566_s11  ;;  %v309_v14 = vstv %s567_s22  ;;  %s578_s7 = sld [smem:[#allocation7 + $0x2]]  ;;  %p279_p4 = scmp.lt.s32.totalorder %s823_s18, 1 }
  0x66   : > { %v306_v13 = vmul.f32 %v305_v12, %v293_v6  ;;  %v310_v16 = vmul.f32 %v309_v14, %v296_v7  ;;  %v338_v19 = vstv %s569_s8  ;;  %v313_v25 = vstv %s1031_s29  ;;  %s581_s8 = sshll.u32 %s823_s18, 5  ;;  %p1125_p0 = scmp.ne.s32.totalorder %s1116_s26, 0 }
  0x67   : > { %v303_v15 = vadd.f32 %v302_v11, %v299_v10  ;;  %v335_v17 = vstv %s568_s23  ;;  %v342_v20 = vstv %s570_s30  ;;  %v339_v22 = vmul.f32 %v338_v19, %v290_v5  ;;  %s280_s5 = scalar_select %p279_p4, %s823_s18, 1 }
  0x68   : > { %v336_v18 = vmul.f32 %v335_v17, %v287_v4  ;;  %v343_v23 = vmul.f32 %v342_v20, %v293_v6  ;;  %v346_v24 = vstv %s571_s25  ;;  %v374_v27 = vstv %s574_s14  ;;  %s561_s23 = sshll.u32 %s1023_s21, 1  ;;  %s838_s18 = smov [#allocation9]  }
  0x69   : > { %v307_v21 = vadd.f32 %v306_v13, %v303_v15  ;;  %v347_v26 = vmul.f32 %v346_v24, %v296_v7  ;;  %v377_v28 = vstv %s575_s13  ;;  %v375_v31 = vmul.f32 %v374_v27, %v287_v4  ;;  %s585_s24 = smul.u32 3, %s280_s5  ;;  %s278_s30 = scalar_lea.vmem [#allocation9], %s561_s23 }
  0x6a   : > { %v340_v30 = vadd.f32 %v339_v22, %v336_v18  ;;  %v378_v32 = vmul.f32 %v377_v28, %v290_v5  ;;  %v381_v33 = vstv %s576_s12  ;;  %v385_v34 = vstv %s1033_s28  ;;  %s428_s25 = sshll.u32 %s278_s30, 4  ;;  %s1056_s12 = scalar_lea.hbm %s1109_s4, %s581_s8  ;;  %s1058_s25 = int_to_ptr.vmem [resolvable:$true] %s428_s25 }
  0x6b   : > { %v311_v29 = vadd.f32 %v310_v16, %v307_v21  ;;  %v382_v38 = vmul.f32 %v381_v33, %v293_v6  ;;  %v350_v39 = vstv %s1035_s6  ;;  %v386_v40 = vmul.f32 %v385_v34, %v296_v7  ;;  %s285_s29 = scalar_lea.vmem %s1108_s3, %s585_s24  ;;  %s414_s28 = scalar_lea.sflag [#allocation4], %s1023_s21 }
  0x6c   : > { %v344_v36 = vadd.f32 %v343_v23, %v340_v30  ;;  %v379_v37 = vadd.f32 %v378_v32, %v375_v31  ;;  %v389_v46 = vstv %s578_s7  ;;  %v315_v59 = vld [vmem:[%s285_s29] sm:$0x1]  ;;  %v573_v62 = vld [vmem:[%s285_s29 + $0x1] sm:$0x1]  ;;  %v579_v6 = vld [vmem:[%s285_s29 + $0x2] sm:$0x1] }
  0x6d   : > { %v314_v35 = vadd.f32 %v313_v25, %v311_v29  ;;  %v316_v0 = vunpack.c.l.bf16 %v315_v59  ;;  %v354_v5 = vunpack.c.l.bf16 %v573_v62  ;;  %v393_v12 = vunpack.c.l.bf16 %v579_v6  ;;  %s741_s6 = scalar_lea.vmem %s1058_s25, 32  ;;  %s745_s7 = sshll.u32 %s838_s18, 4  ;;  %s746_s7 = int_to_ptr.vmem [resolvable:$false] %s745_s7 }
  0x6e   : > { %v348_v42 = vadd.f32 %v347_v26, %v344_v36  ;;  %v383_v43 = vadd.f32 %v382_v38, %v379_v37  ;;  %p742_p12 = scmp.ne.s32.totalorder %s1058_s25, %s741_s6  ;;  %s747_s5 = scalar_lea.vmem %s746_s7, 64 }
  0x6f   : > { %v320_v41 = vand.u32 2147483647, %v314_v35  ;;  %v317_v7 = vmax.f32 %v314_v35, 0.0  ;;  %v318_v8 = vmul.f32 %v316_v0, %v314_v35  ;;  %p748_p11 = scmp.lt.s32.totalorder %s1058_s25, %s746_s7  ;;  %p749_p3 = scmp.lt.s32.totalorder %s747_s5, %s741_s6 }
  0x70   : > { %v351_v45 = vadd.f32 %v350_v39, %v348_v42  ;;  %v387_v47 = vadd.f32 %v386_v40, %v383_v43  ;;  %p743_p5 = pnand %p742_p12, %p1125_p0 }
  0x71   : > { %v321_v44 = vsub.f32 0.0, %v320_v41  ;;  %v319_v19 = vsub.f32 %v317_v7, %v318_v8  ;;  %p750_p7 = por %p749_p3, %p748_p11 }
  0x72   : > { %v358_v49 = vand.u32 2147483647, %v351_v45  ;;  %v390_v50 = vadd.f32 %v389_v46, %v387_v47  ;;  %v355_v15 = vmax.f32 %v351_v45, 0.0  ;;  %v356_v16 = vmul.f32 %v354_v5, %v351_v45  ;;  %p744_p10 = pneg %p743_p5 }
  0x73   : > { %v322_v48 = vmul.f32 1.442695, %v321_v44 }
  0x74   : > { %v359_v51 = vsub.f32 0.0, %v358_v49  ;;  %v397_v52 = vand.u32 2147483647, %v390_v50  ;;  %v394_v20 = vmax.f32 %v390_v50, 0.0  ;;  %v395_v24 = vmul.f32 %v393_v12, %v390_v50  ;;  %p751_p9 = pnand %p750_p7, %p744_p10 }
  0x75   : > { %671 = vpow2.f32 %v322_v48  ;;  %v357_v27 = vsub.f32 %v355_v15, %v356_v16 }
  0x76   : > { %v360_v53 = vmul.f32 1.442695, %v359_v51  ;;  %v398_v54 = vsub.f32 0.0, %v397_v52  ;;  %v396_v33 = vsub.f32 %v394_v20, %v395_v24 }
  0x78   : > { %673 = vpow2.f32 %v360_v53  ;;  %v399_v55 = vmul.f32 1.442695, %v398_v54 }
  0x7a   : > { %675 = vpow2.f32 %v399_v55 }
  0x7f   : > { %v672_v56 = vpop.eup %671 }
  0x80   : > { %v324_v57 = vadd.f32 1.0, %v672_v56  ;;  %v327_v60 = vmul.f32 -0.5, %v672_v56  ;;  %v330_v4 = vand.u32 2147483647, %v672_v56 }
  0x82   : > { %677 = vlog2.f32 %v324_v57  ;;  %v674_v58 = vpop.eup %673  ;;  %v328_v1 = vadd.f32 1.0, %v327_v60  ;;  %vm1045_vm0 = vcmp.lt.f32.partialorder %v330_v4, 0.0004427343 }
  0x83   : > { %v362_v61 = vadd.f32 1.0, %v674_v58  ;;  %v365_v2 = vmul.f32 -0.5, %v674_v58  ;;  %v368_v17 = vand.u32 2147483647, %v674_v58 }
  0x84   : > { %v676_v63 = vpop.eup %675  ;;  %v329_v10 = vmul.f32 %v672_v56, %v328_v1 }
  0x85   : > { %679 = vlog2.f32 %v362_v61  ;;  %v401_v3 = vadd.f32 1.0, %v676_v63  ;;  %v404_v9 = vmul.f32 -0.5, %v676_v63  ;;  %v366_v11 = vadd.f32 1.0, %v365_v2 }
  0x86   : > { %v407_v25 = vand.u32 2147483647, %v676_v63  ;;  %vm369_vm1 = vcmp.lt.f32.partialorder %v368_v17, 0.0004427343 }
  0x87   : > { %681 = vlog2.f32 %v401_v3  ;;  %v405_v21 = vadd.f32 1.0, %v404_v9  ;;  %v367_v23 = vmul.f32 %v674_v58, %v366_v11 }
  0x88   : > { %vm408_vm2 = vcmp.lt.f32.partialorder %v407_v25, 0.0004427343 }
  0x89   : > { %v406_v30 = vmul.f32 %v676_v63, %v405_v21 }
  0x8c   : > { %v678_v13 = vpop.eup %677 }
  0x8d   : > { %v326_v18 = vmul.f32 0.6931472, %v678_v13 }
  0x8f   : > { %v332_v22 = vsel %vm1045_vm0, %v329_v10, %v326_v18  ;;  %v680_v26 = vpop.eup %679 }
  0x90   : > { %v364_v28 = vmul.f32 0.6931472, %v680_v26  ;;  %v333_v29 = vadd.f32 %v332_v22, %v319_v19 }
  0x91   : > { %v682_v31 = vpop.eup %681 }
  0x92   : > { %v370_v32 = vsel %vm369_vm1, %v367_v23, %v364_v28  ;;  %v403_v35 = vmul.f32 0.6931472, %v682_v31 }
  0x93   : > { %v371_v34 = vadd.f32 %v370_v32, %v357_v27 }
  0x94   : > { %v409_v37 = vsel %vm408_vm2, %v406_v30, %v403_v35 }
  0x95   : > { %v372_v36 = vadd.f32 %v371_v34, %v333_v29  ;;  %v410_v38 = vadd.f32 %v409_v37, %v396_v33 }
  0x97   : > { %v411_v39 = vadd.f32 %v410_v38, %v372_v36 }
  0x99   : > { %412 = vst [vmem:[%s278_s30] sm:$0x3] %v411_v39 }
  0x9a   : > { %754 = shalt.err (!%p751_p9)
}
  0x9b   : > { %s755_s21 = scalar_lea.hbm %s1056_s12, 32  ;;  %s759_s22 = scalar_lea.hbm %s1109_s4, 64 }
  0x9c   : > { %p756_p2 = scmp.ne.s32.totalorder %s1056_s12, %s755_s21  ;;  %p760_p8 = scmp.lt.u32.totalorder %s1056_s12, %s1109_s4 }
  0x9d   : > { %p761_p13 = scmp.lt.u32.totalorder %s759_s22, %s755_s21  ;;  %p763_p12 = scmp.lt.u32.totalorder %s755_s21, %s1056_s12 }
  0x9e   : > { %p757_p6 = pnand %p756_p2, %p1125_p0 }
  0x9f   : > { %p762_p4 = por %p761_p13, %p760_p8 }
  0xa0   : > { %p758_p1 = pneg %p757_p6 }
  0xa1   : > { %p764_p5 = por %p763_p12, %p762_p4 }
  0xa3   : > { %p765_p10 = pnand %p764_p5, %p758_p1 }
  0xa5   : > { %768 = shalt.err (!%p765_p10)
}
  0xa6   : > { %596 = dma.vmem_to_hbm [thread:$0]  (%p1125_p0), %s1058_s25, 32, %s1056_s12, %s414_s28  }
  0xa7 PF: > { %s440_s8 = sand.u32 1, %s811_s15   ;;  %p1126_p11 = scmp.ne.s32.totalorder %s1117_s27, 0 }
  0xa8   : > { %p1127_p3 = scmp.ge.s32.totalorder %s831_s20, 2  ;;  %s441_s30 = scalar_lea.sflag [#allocation4], %s440_s8 }
  0xaa   : > { %p610_p7 = pnand %p1127_p3, %p1126_p11 }
  0xac   : > { %806 = dma.done.wait (!%p610_p7), %s441_s30, 32  }
  0xad   : > { %808 = vsyncadd (!%p610_p7), %s441_s30, 4294967264  ;;  %s22_s20 = sadd.s32 1, %s831_s20   ;;  %s1128_s15 = smov %s815_s16 }
  0xae   : > { %p19_p9 = scmp.ge.s32.totalorder %s22_s20, 4   ;;  %s1129_s16 = smov %s819_s17 }
  0xaf   : > { %s1130_s17 = smov %s980_s10  ;;  %s1131_s18 = smov %s827_s19 }
  0xb0   : > { %s1132_s19 = smov %s1134_s9  ;;  %21 = sbr.rel (!%p19_p9) target bundleno = 8 (0x8), region = 99 }
  0xb7   :  { %446 = vsyncpa [#allocation3], 1 }
  0xb8   :  { %448 = vsyncpa [#allocation3 + $0x1], 1 }
  0xb9   :  { %449 = vsyncpa [#allocation4], 1 }
  0xba   :  { %451 = vsyncpa [#allocation4 + $0x1], 1 }
  0xbb   :  { %452 = vsyncpa [#allocation5], 1 }
  0xbc   :  { %454 = vsyncpa [#allocation5 + $0x1], 1 }
  0xbd   :  { %455 = vsyncpa [#allocation6], 1 }
  0xbe   :  { %457 = vsyncpa [#allocation6 + $0x1], 1 }

</bundles_post_ra>
